<compile_context>
chip_gen: v7x
topology: tpu7x:2x2x1
jax: 0.10.0
libtpu: 0.0.40
codegen_flags: <defaults>
</compile_context>

<pallas_src>
import jax
import jax.numpy as jnp
from jax.experimental import pallas as pl
from jax.experimental.pallas import tpu as pltpu


def _round_up(x, m):
    return ((x + m - 1) // m) * m


def _pick_spatial_tile_chunks(n_chunks, cap_chunks, want_tiles):
    """Largest divisor d of n_chunks with d <= cap_chunks, preferring choices
    that leave at least `want_tiles` tiles (grid steps) along the spatial axis."""
    divisors = [d for d in range(1, n_chunks + 1) if n_chunks % d == 0]
    fits = [d for d in divisors if d <= cap_chunks]          # always contains 1
    preferred = [d for d in fits if n_chunks // d >= want_tiles]
    return max(preferred) if preferred else max(fits)


def _yolo_head_kernel(x_ref, w_ref, b_ref, o_ref):
    # x_ref: (1, C_in, T)  w_ref: (C_out, C_in)  b_ref: (C_out, 1)  o_ref: (1, C_out, T)
    acc = jnp.dot(w_ref[...], x_ref[0, :, :],                 # MXU, caller dtype
                  preferred_element_type=jnp.float32)         # f32 accumulate
    o_ref[0, :, :] = (acc + b_ref[...]).astype(o_ref.dtype)   # f32 epilogue, lane-dense store


def yolo_head_forward(x_nchw, weight, bias, *,
                      input_block_bytes=4 * 1024 * 1024,
                      min_spatial_tiles=4,
                      input_buffers=2):
    """Pallas implementation of YOLOHead.forward.

    Args:
      x_nchw: (N, 512, H, W) input in PyTorch NCHW layout (f32 or bf16).
              Pass bf16 to halve the dominant HBM read (kernel computes in
              x's dtype; accumulation and output stay f32).
      weight: (C_out, C_in) -- the 1x1 conv kernel with spatial dims squeezed
              (torch weight shape is (C_out, C_in, 1, 1)).
      bias:   (C_out,).
      input_block_bytes: per-block byte budget for the (C_in, thw) input tile.
      min_spatial_tiles: try to give the grid at least this many spatial steps
              (pipelining + v7x dual-TC occupancy).
      input_buffers: pipeline depth for the input BlockSpec (2 = default
              double buffering; 3 enables pl.Buffered(3)).
    Returns:
      (N, H, W, C_out) float32, matching `detector(x).permute(0, 2, 3, 1)`.
    """
    N, C_in, H, W = x_nchw.shape
    C_out = weight.shape[0]
    hw = H * W

    # --- Spatial tiling ------------------------------------------------------
    # Pad the flattened spatial axis ONLY to a multiple of 128 lanes; the tile
    # is then chosen as a divisor of that padded extent, so no further padding
    # (and no extra HBM traffic) is ever introduced by the tile size.
    hw_pad = _round_up(hw, 128)
    n_chunks = hw_pad // 128

    itemsize = jnp.dtype(x_nchw.dtype).itemsize
    cap_chunks = max(1, (input_block_bytes // (C_in * itemsize)) // 128)
    want_tiles = min(min_spatial_tiles, n_chunks)
    d = _pick_spatial_tile_chunks(n_chunks, cap_chunks, want_tiles)
    thw = 128 * d
    n_tiles = n_chunks // d          # exact by construction

    # NCHW -> (N, C_in, H*W) is a pure reshape (no data movement).
    x_flat = x_nchw.reshape(N, C_in, hw)
    if hw_pad != hw:
        x_flat = jnp.pad(x_flat, ((0, 0), (0, 0), (0, hw_pad - hw)))

    # Tiny, grid-invariant operands: weight in the input's dtype (no in-kernel
    # cast), bias kept f32 (broadcasts over lanes).
    w = weight.astype(x_nchw.dtype)
    b2 = bias.reshape(C_out, 1).astype(jnp.float32)

    # --- dtype-aware VMEM budget ---------------------------------------------
    in_bytes = input_buffers * C_in * thw * itemsize
    out_bytes = 2 * C_out * thw * 4
    param_bytes = 2 * (C_out * C_in * itemsize + C_out * 4)
    need = in_bytes + out_bytes + param_bytes
    vmem_limit = min(max(int(1.5 * need) + (4 << 20), 16 << 20), 48 << 20)

    x_spec_kwargs = {}
    if input_buffers > 2:
        x_spec_kwargs["pipeline_mode"] = pl.Buffered(input_buffers)

    grid = (N, n_tiles)

    out_ncs = pl.pallas_call(
        _yolo_head_kernel,
        out_shape=jax.ShapeDtypeStruct((N, C_out, hw_pad), jnp.float32),
        grid_spec=pltpu.PrefetchScalarGridSpec(
            num_scalar_prefetch=0,
            grid=grid,
            in_specs=[
                pl.BlockSpec((1, C_in, thw), lambda n, s: (n, 0, s), **x_spec_kwargs),
                pl.BlockSpec((C_out, C_in), lambda n, s: (0, 0)),
                pl.BlockSpec((C_out, 1), lambda n, s: (0, 0)),
            ],
            out_specs=pl.BlockSpec((1, C_out, thw), lambda n, s: (n, 0, s)),
        ),
        compiler_params=pltpu.CompilerParams(
            dimension_semantics=("parallel", "parallel"),
            vmem_limit_bytes=vmem_limit,
        ),
    )(x_flat, w, b2)

    # Padded spatial columns hold bias-valued garbage (W@0 + b); the :hw slice
    # removes them.  Only the small (N, C_out, H*W) output gets the NHWC relayout.
    out_ncs = out_ncs[:, :, :hw].reshape(N, C_out, H, W)
    return jnp.transpose(out_ncs, (0, 2, 3, 1))


if __name__ == "__main__":
    # Module hyperparameters (small, but C_in=512 is fixed by the module).
    grid_size = 16
    num_classes = 3
    num_anchors = 3
    C_in = 512
    C_out = num_anchors * (5 + num_classes)  # 24
    batch = 2

    key = jax.random.PRNGKey(0)
    kx, kw, kb = jax.random.split(key, 3)

    # Deterministic synthetic parameters (shapes follow nn.Conv2d(512, C_out, 1);
    # torch weight (C_out, C_in, 1, 1) with spatial dims squeezed).
    bound = 1.0 / (C_in ** 0.5)
    weight = jax.random.uniform(kw, (C_out, C_in), jnp.float32, -bound, bound)
    bias = jax.random.uniform(kb, (C_out,), jnp.float32, -bound, bound)

    # Input in PyTorch NCHW layout.
    x = jax.random.normal(kx, (batch, C_in, grid_size, grid_size), jnp.float32)

    fwd = jax.jit(yolo_head_forward)  # fuses the (tiny) glue around the kernel
    out = jax.block_until_ready(fwd(x, weight, bias))

    # Reference (XLA einsum).  Both sides use the TPU's default f32 matmul
    # precision, so compare with a tolerance that also covers bf16-pass lowering.
    ref_f32 = jnp.einsum("nchw,oc->nhwo", x, weight) + bias[None, None, None, :]
    assert out.shape == (batch, grid_size, grid_size, C_out), out.shape
    assert jnp.allclose(out, ref_f32, atol=2e-2, rtol=2e-2), "mismatch vs f32 reference"

    # bf16 activation path (halves the dominant HBM read); checked against a
    # bf16-matched reference.
    x_bf16 = x.astype(jnp.bfloat16)
    out_bf16 = jax.block_until_ready(jax.jit(yolo_head_forward)(x_bf16, weight, bias))
    x_r = x_bf16.astype(jnp.float32)
    w_r = weight.astype(jnp.bfloat16).astype(jnp.float32)
    ref_bf16 = jnp.einsum("nchw,oc->nhwo", x_r, w_r) + bias[None, None, None, :]
    assert out_bf16.shape == (batch, grid_size, grid_size, C_out), out_bf16.shape
    assert jnp.allclose(out_bf16, ref_bf16, atol=2e-3, rtol=2e-3), "mismatch vs bf16 reference"

    print("KERNEL_OK")
</pallas_src>

<mosaic_0001>
module attributes {stable_mosaic.version = 11 : i64} {
  func.func @_yolo_head_kernel(%arg0: i32, %arg1: i32, %arg2: memref<1x512x128xf32, #tpu.memory_space<vmem>>, %arg3: memref<24x512xf32, #tpu.memory_space<vmem>>, %arg4: memref<24x1xf32, #tpu.memory_space<vmem>>, %arg5: memref<1x24x128xf32, #tpu.memory_space<vmem>>) attributes {dimension_semantics = [#tpu.dimension_semantics<parallel>, #tpu.dimension_semantics<parallel>], iteration_bounds = array<i64: 2, 2>, scalar_prefetch = 0 : i64, scratch_operands = 0 : i64, tpu.core_type = #tpu.core_type<tc>, window_params = [{transform_indices = @transform_0, window_bounds = array<i64: 1, 512, 128>}, {pipeline_mode = #tpu.pipeline_mode<synchronous>, transform_indices = @transform_1, window_bounds = array<i64: 24, 512>}, {pipeline_mode = #tpu.pipeline_mode<synchronous>, transform_indices = @transform_2, window_bounds = array<i64: 24, 1>}, {transform_indices = @transform_3, window_bounds = array<i64: 1, 24, 128>}]} {
    %c0 = arith.constant 0 : index
    %c0_0 = arith.constant 0 : index
    %0 = vector.load %arg3[%c0, %c0_0] : memref<24x512xf32, #tpu.memory_space<vmem>>, vector<24x512xf32>
    %c0_1 = arith.constant 0 : index
    %c0_2 = arith.constant 0 : index
    %c0_3 = arith.constant 0 : index
    %1 = vector.load %arg2[%c0_1, %c0_2, %c0_3] : memref<1x512x128xf32, #tpu.memory_space<vmem>>, vector<1x512x128xf32>
    %2 = vector.shape_cast %1 : vector<1x512x128xf32> to vector<512x128xf32>
    %cst = arith.constant dense<0.000000e+00> : vector<24x128xf32>
    %3 = tpu.matmul %0, %2, %cst {dimension_numbers = #tpu.dot_dimension_numbers<[1], [0], [0], [1], [0, 0, 1, 1], [], []>} : vector<24x512xf32>, vector<512x128xf32>, vector<24x128xf32> -> vector<24x128xf32>
    %c0_4 = arith.constant 0 : index
    %c0_5 = arith.constant 0 : index
    %4 = vector.load %arg4[%c0_4, %c0_5] : memref<24x1xf32, #tpu.memory_space<vmem>>, vector<24x1xf32>
    %5 = vector.broadcast %4 : vector<24x1xf32> to vector<24x128xf32>
    %6 = arith.addf %3, %5 : vector<24x128xf32>
    %c0_6 = arith.constant 0 : index
    %c0_7 = arith.constant 0 : index
    %c0_8 = arith.constant 0 : index
    %7 = vector.load %arg5[%c0_6, %c0_7, %c0_8] : memref<1x24x128xf32, #tpu.memory_space<vmem>>, vector<1x24x128xf32>
    %8 = vector.shape_cast %7 : vector<1x24x128xf32> to vector<24x128xf32>
    %9 = vector.shape_cast %6 : vector<24x128xf32> to vector<1x24x128xf32>
    tpu.vector_store %arg5[%c0_6, %c0_7, %c0_8], %9 {strides = array<i32>} : memref<1x24x128xf32, #tpu.memory_space<vmem>>, vector<1x24x128xf32>,
    return
  }
  func.func @transform_0(%arg0: i32, %arg1: i32) -> (i32, i32, i32) {
    %c0_i32 = arith.constant 0 : i32
    %c0_i32_0 = arith.constant 0 : i32
    return %arg0, %c0_i32, %arg1 : i32, i32, i32
  }
  func.func @transform_1(%arg0: i32, %arg1: i32) -> (i32, i32) {
    %c0_i32 = arith.constant 0 : i32
    %c0_i32_0 = arith.constant 0 : i32
    %c0_i32_1 = arith.constant 0 : i32
    return %c0_i32, %c0_i32_0 : i32, i32
  }
  func.func @transform_2(%arg0: i32, %arg1: i32) -> (i32, i32) {
    %c0_i32 = arith.constant 0 : i32
    %c0_i32_0 = arith.constant 0 : i32
    %c0_i32_1 = arith.constant 0 : i32
    return %c0_i32, %c0_i32_0 : i32, i32
  }
  func.func @transform_3(%arg0: i32, %arg1: i32) -> (i32, i32, i32) {
    %c0_i32 = arith.constant 0 : i32
    %c0_i32_0 = arith.constant 0 : i32
    return %arg0, %c0_i32, %arg1 : i32, i32, i32
  }
}

</mosaic_0001>

<bundles_post_ra>
// kernel: yolo_head_forward.1
= control target key start
LH: loop header
LB: loop body
LE: loop exit
PB: predicated region body
PF: predicated region fallthrough
CT: control target
= control target key end

     0   :  { %s1145_s12 = smov 0   ;;  %s1147_s13 = smov 0   ;;  %s1488_s0 = inlined_call_operand.vmem [shape: f32[2,512,256], index: 0, kind: input, shape index: {}]   ;;  %s1489_s1 = inlined_call_operand.vmem [shape: f32[24,512], index: 1, kind: input, shape index: {}]   ;;  %s1490_s2 = inlined_call_operand.vmem [shape: f32[24,1], index: 2, kind: input, shape index: {}]   ;;  %s1491_s3 = inlined_call_operand.vmem [shape: f32[2,24,256], index: 3, kind: output, shape index: {}]  }
   0x1   :  { %s1149_s14 = smov 0   ;;  %s1151_s15 = smov 0  }
   0x2   :  { %s1153_s16 = smov 0   ;;  %s1155_s17 = smov 0  }
   0x3   :  { %s1157_s18 = smov 0  }
   0x4 LB: > { %s22_s19 = sadd.s32 1, %s1114_s16  ;;  %s25_s20 = sadd.s32 1, %s1118_s17  ;;  %s1122_s18 = sphi %s1157_s18, %s13_s18   ;;  %s1118_s17 = sphi %s1155_s17, %s1498_s17   ;;  %s1114_s16 = sphi %s1153_s16, %s1497_s16   ;;  %s1110_s15 = sphi %s1151_s15, %s1496_s15   ;;  %s1106_s14 = sphi %s1149_s14, %s1495_s14   ;;  %s1102_s13 = sphi %s1147_s13, %s1494_s13   ;;  %s1098_s12 = sphi %s1145_s12, %s1493_s12  }
   0x5   : > { %p23_p0 = scmp.ge.s32.totalorder %s22_s19, 2  ;;  %s849_s21 = sadd.s32 4294967295, %s1122_s18  }
   0x6   : > { %p41_p1 = scmp.ne.s32.totalorder %s1102_s13, %s1098_s12  ;;  %p42_p2 = scmp.eq.s32.totalorder %s1122_s18, 0 }
   0x7   : > { %s1500_s19 = smov (%p23_p0, %s22_s19), 0  ;;  %s1502_s20 = smov (!%p23_p0, %s25_s20), %s1118_s17 }
   0x8   : > { %p27_p3 = scmp.ge.s32.totalorder %s1502_s20, 2  ;;  %p115_p4 = scmp.eq.s32.totalorder %s849_s21, 3 }
   0x9   : > { %s30_s22 = ssub.s32 %s1114_s16, %s1500_s19  ;;  %p43_p5 = por %p42_p2, %p41_p1 }
   0xa   : > { %s1504_s20 = smov (%p27_p3, %s1502_s20), 0  ;;  %p1193_p6 = por %p115_p4, %p41_p1 }
   0xb   : > { %s29_s24 = ssub.s32 %s1118_s17, %s1504_s20  ;;  %s34_s26 = sadd.s32 1, %s1102_s13 }
   0xc   : > { %s31_s25 = sor.u32 %s30_s22, %s29_s24  ;;  %p852_p8 = scmp.ge.s32.totalorder %s1122_s18, 4 }
   0xd   : > { %p32_p7 = scmp.eq.s32.totalorder %s31_s25, 0 }
   0xe   : > { %143 = sbr.rel (%p852_p8) target bundleno = 59 (0x3b), region = 24 }
   0xf   : > { %s1201_s27 = scalar_select %p32_p7, %s1102_s13, %s34_s26  }
  0x15   : > { %146 = sbr.rel (!%p43_p5) target bundleno = 59 (0x3b), region = 28  ;;  %s148_s28 = sand.u32 (%p43_p5), 1, %s1102_s13  }
  0x16   : > { %s854_s29 = sshll.u32 (%p43_p5), %s1118_s17, 7  ;;  %s853_s30 = sshll.u32 (%p43_p5), %s148_s28, 9 }
  0x17   : > { %s152_s4 = sadd.s32 (%p43_p5), %s1114_s16, %s854_s29  ;;  %s1215_s9 = scalar_lea.vmem (%p43_p5), [#allocation2], %s853_s30 }
  0x18   : > { %s855_s5 = sshll.u32 (%p43_p5), %s152_s4, 3 }
  0x19   : > { %s1210_s8 = scalar_lea.vmem (%p43_p5), %s1488_s0, %s855_s5 }
  0x1a   : > { %v308_v0 = vld [vmem:[%s1210_s8] sm:$0xff] (%p43_p5)  ;;  %v310_v1 = vld [vmem:[%s1210_s8 + $0x10] sm:$0xff] (%p43_p5) }
  0x1b   : > { %v312_v2 = vld [vmem:[%s1210_s8 + $0x20] sm:$0xff] (%p43_p5)  ;;  %309 = vst [vmem:[%s1215_s9] sm:$0xff] (%p43_p5), %v308_v0  ;;  %311 = vst [vmem:[%s1215_s9 + $0x8] sm:$0xff] (%p43_p5), %v310_v1  ;;  %v314_v3 = vld [vmem:[%s1210_s8 + $0x30] sm:$0xff] (%p43_p5) }
  0x1c   : > { %313 = vst [vmem:[%s1215_s9 + $0x10] sm:$0xff] %v312_v2  ;;  %v316_v4 = vld [vmem:[%s1210_s8 + $0x40] sm:$0xff]  ;;  %v318_v5 = vld [vmem:[%s1210_s8 + $0x50] sm:$0xff]  ;;  %315 = vst [vmem:[%s1215_s9 + $0x18] sm:$0xff] %v314_v3 }
  0x1d   : > { %317 = vst [vmem:[%s1215_s9 + $0x20] sm:$0xff] %v316_v4  ;;  %319 = vst [vmem:[%s1215_s9 + $0x28] sm:$0xff] %v318_v5  ;;  %v320_v6 = vld [vmem:[%s1210_s8 + $0x60] sm:$0xff]  ;;  %v322_v7 = vld [vmem:[%s1210_s8 + $0x70] sm:$0xff] }
  0x1e   : > { %v324_v8 = vld [vmem:[%s1210_s8 + $0x80] sm:$0xff]  ;;  %321 = vst [vmem:[%s1215_s9 + $0x30] sm:$0xff] %v320_v6  ;;  %323 = vst [vmem:[%s1215_s9 + $0x38] sm:$0xff] %v322_v7  ;;  %v326_v9 = vld [vmem:[%s1210_s8 + $0x90] sm:$0xff] }
  0x1f   : > { %325 = vst [vmem:[%s1215_s9 + $0x40] sm:$0xff] %v324_v8  ;;  %v328_v10 = vld [vmem:[%s1210_s8 + $0xa0] sm:$0xff]  ;;  %v330_v11 = vld [vmem:[%s1210_s8 + $0xb0] sm:$0xff]  ;;  %327 = vst [vmem:[%s1215_s9 + $0x48] sm:$0xff] %v326_v9 }
  0x20   : > { %329 = vst [vmem:[%s1215_s9 + $0x50] sm:$0xff] %v328_v10  ;;  %331 = vst [vmem:[%s1215_s9 + $0x58] sm:$0xff] %v330_v11  ;;  %v332_v12 = vld [vmem:[%s1210_s8 + $0xc0] sm:$0xff]  ;;  %v334_v13 = vld [vmem:[%s1210_s8 + $0xd0] sm:$0xff] }
  0x21   : > { %v336_v14 = vld [vmem:[%s1210_s8 + $0xe0] sm:$0xff]  ;;  %333 = vst [vmem:[%s1215_s9 + $0x60] sm:$0xff] %v332_v12  ;;  %335 = vst [vmem:[%s1215_s9 + $0x68] sm:$0xff] %v334_v13  ;;  %v338_v15 = vld [vmem:[%s1210_s8 + $0xf0] sm:$0xff] }
  0x22   : > { %337 = vst [vmem:[%s1215_s9 + $0x70] sm:$0xff] %v336_v14  ;;  %v340_v16 = vld [vmem:[%s1210_s8 + $0x100] sm:$0xff]  ;;  %v342_v17 = vld [vmem:[%s1210_s8 + $0x110] sm:$0xff]  ;;  %339 = vst [vmem:[%s1215_s9 + $0x78] sm:$0xff] %v338_v15 }
  0x23   : > { %341 = vst [vmem:[%s1215_s9 + $0x80] sm:$0xff] %v340_v16  ;;  %343 = vst [vmem:[%s1215_s9 + $0x88] sm:$0xff] %v342_v17  ;;  %v344_v18 = vld [vmem:[%s1210_s8 + $0x120] sm:$0xff]  ;;  %v346_v19 = vld [vmem:[%s1210_s8 + $0x130] sm:$0xff] }
  0x24   : > { %v348_v20 = vld [vmem:[%s1210_s8 + $0x140] sm:$0xff]  ;;  %345 = vst [vmem:[%s1215_s9 + $0x90] sm:$0xff] %v344_v18  ;;  %347 = vst [vmem:[%s1215_s9 + $0x98] sm:$0xff] %v346_v19  ;;  %v350_v21 = vld [vmem:[%s1210_s8 + $0x150] sm:$0xff] }
  0x25   : > { %349 = vst [vmem:[%s1215_s9 + $0xa0] sm:$0xff] %v348_v20  ;;  %v352_v22 = vld [vmem:[%s1210_s8 + $0x160] sm:$0xff]  ;;  %v354_v23 = vld [vmem:[%s1210_s8 + $0x170] sm:$0xff]  ;;  %351 = vst [vmem:[%s1215_s9 + $0xa8] sm:$0xff] %v350_v21 }
  0x26   : > { %353 = vst [vmem:[%s1215_s9 + $0xb0] sm:$0xff] %v352_v22  ;;  %355 = vst [vmem:[%s1215_s9 + $0xb8] sm:$0xff] %v354_v23  ;;  %v356_v24 = vld [vmem:[%s1210_s8 + $0x180] sm:$0xff]  ;;  %v358_v25 = vld [vmem:[%s1210_s8 + $0x190] sm:$0xff] }
  0x27   : > { %v360_v26 = vld [vmem:[%s1210_s8 + $0x1a0] sm:$0xff]  ;;  %357 = vst [vmem:[%s1215_s9 + $0xc0] sm:$0xff] %v356_v24  ;;  %359 = vst [vmem:[%s1215_s9 + $0xc8] sm:$0xff] %v358_v25  ;;  %v362_v27 = vld [vmem:[%s1210_s8 + $0x1b0] sm:$0xff] }
  0x28   : > { %361 = vst [vmem:[%s1215_s9 + $0xd0] sm:$0xff] %v360_v26  ;;  %v364_v28 = vld [vmem:[%s1210_s8 + $0x1c0] sm:$0xff]  ;;  %v366_v29 = vld [vmem:[%s1210_s8 + $0x1d0] sm:$0xff]  ;;  %363 = vst [vmem:[%s1215_s9 + $0xd8] sm:$0xff] %v362_v27 }
  0x29   : > { %365 = vst [vmem:[%s1215_s9 + $0xe0] sm:$0xff] %v364_v28  ;;  %367 = vst [vmem:[%s1215_s9 + $0xe8] sm:$0xff] %v366_v29  ;;  %v368_v30 = vld [vmem:[%s1210_s8 + $0x1e0] sm:$0xff]  ;;  %v370_v31 = vld [vmem:[%s1210_s8 + $0x1f0] sm:$0xff] }
  0x2a   : > { %v372_v32 = vld [vmem:[%s1210_s8 + $0x200] sm:$0xff]  ;;  %369 = vst [vmem:[%s1215_s9 + $0xf0] sm:$0xff] %v368_v30  ;;  %371 = vst [vmem:[%s1215_s9 + $0xf8] sm:$0xff] %v370_v31  ;;  %v374_v33 = vld [vmem:[%s1210_s8 + $0x210] sm:$0xff] }
  0x2b   : > { %373 = vst [vmem:[%s1215_s9 + $0x100] sm:$0xff] %v372_v32  ;;  %v376_v34 = vld [vmem:[%s1210_s8 + $0x220] sm:$0xff]  ;;  %v378_v35 = vld [vmem:[%s1210_s8 + $0x230] sm:$0xff]  ;;  %375 = vst [vmem:[%s1215_s9 + $0x108] sm:$0xff] %v374_v33 }
  0x2c   : > { %377 = vst [vmem:[%s1215_s9 + $0x110] sm:$0xff] %v376_v34  ;;  %379 = vst [vmem:[%s1215_s9 + $0x118] sm:$0xff] %v378_v35  ;;  %v380_v36 = vld [vmem:[%s1210_s8 + $0x240] sm:$0xff]  ;;  %v382_v37 = vld [vmem:[%s1210_s8 + $0x250] sm:$0xff] }
  0x2d   : > { %v384_v38 = vld [vmem:[%s1210_s8 + $0x260] sm:$0xff]  ;;  %381 = vst [vmem:[%s1215_s9 + $0x120] sm:$0xff] %v380_v36  ;;  %383 = vst [vmem:[%s1215_s9 + $0x128] sm:$0xff] %v382_v37  ;;  %v386_v39 = vld [vmem:[%s1210_s8 + $0x270] sm:$0xff] }
  0x2e   : > { %385 = vst [vmem:[%s1215_s9 + $0x130] sm:$0xff] %v384_v38  ;;  %v388_v40 = vld [vmem:[%s1210_s8 + $0x280] sm:$0xff]  ;;  %v390_v41 = vld [vmem:[%s1210_s8 + $0x290] sm:$0xff]  ;;  %387 = vst [vmem:[%s1215_s9 + $0x138] sm:$0xff] %v386_v39 }
  0x2f   : > { %389 = vst [vmem:[%s1215_s9 + $0x140] sm:$0xff] %v388_v40  ;;  %391 = vst [vmem:[%s1215_s9 + $0x148] sm:$0xff] %v390_v41  ;;  %v392_v42 = vld [vmem:[%s1210_s8 + $0x2a0] sm:$0xff]  ;;  %v394_v43 = vld [vmem:[%s1210_s8 + $0x2b0] sm:$0xff] }
  0x30   : > { %v396_v44 = vld [vmem:[%s1210_s8 + $0x2c0] sm:$0xff]  ;;  %393 = vst [vmem:[%s1215_s9 + $0x150] sm:$0xff] %v392_v42  ;;  %395 = vst [vmem:[%s1215_s9 + $0x158] sm:$0xff] %v394_v43  ;;  %v398_v45 = vld [vmem:[%s1210_s8 + $0x2d0] sm:$0xff] }
  0x31   : > { %397 = vst [vmem:[%s1215_s9 + $0x160] sm:$0xff] %v396_v44  ;;  %v400_v46 = vld [vmem:[%s1210_s8 + $0x2e0] sm:$0xff]  ;;  %v402_v47 = vld [vmem:[%s1210_s8 + $0x2f0] sm:$0xff]  ;;  %399 = vst [vmem:[%s1215_s9 + $0x168] sm:$0xff] %v398_v45 }
  0x32   : > { %401 = vst [vmem:[%s1215_s9 + $0x170] sm:$0xff] %v400_v46  ;;  %403 = vst [vmem:[%s1215_s9 + $0x178] sm:$0xff] %v402_v47  ;;  %v404_v48 = vld [vmem:[%s1210_s8 + $0x300] sm:$0xff]  ;;  %v406_v49 = vld [vmem:[%s1210_s8 + $0x310] sm:$0xff] }
  0x33   : > { %v408_v50 = vld [vmem:[%s1210_s8 + $0x320] sm:$0xff]  ;;  %405 = vst [vmem:[%s1215_s9 + $0x180] sm:$0xff] %v404_v48  ;;  %407 = vst [vmem:[%s1215_s9 + $0x188] sm:$0xff] %v406_v49  ;;  %v410_v51 = vld [vmem:[%s1210_s8 + $0x330] sm:$0xff] }
  0x34   : > { %409 = vst [vmem:[%s1215_s9 + $0x190] sm:$0xff] %v408_v50  ;;  %v412_v52 = vld [vmem:[%s1210_s8 + $0x340] sm:$0xff]  ;;  %v414_v53 = vld [vmem:[%s1210_s8 + $0x350] sm:$0xff]  ;;  %411 = vst [vmem:[%s1215_s9 + $0x198] sm:$0xff] %v410_v51 }
  0x35   : > { %413 = vst [vmem:[%s1215_s9 + $0x1a0] sm:$0xff] %v412_v52  ;;  %415 = vst [vmem:[%s1215_s9 + $0x1a8] sm:$0xff] %v414_v53  ;;  %v416_v54 = vld [vmem:[%s1210_s8 + $0x360] sm:$0xff]  ;;  %v418_v55 = vld [vmem:[%s1210_s8 + $0x370] sm:$0xff] }
  0x36   : > { %v420_v56 = vld [vmem:[%s1210_s8 + $0x380] sm:$0xff]  ;;  %417 = vst [vmem:[%s1215_s9 + $0x1b0] sm:$0xff] %v416_v54  ;;  %419 = vst [vmem:[%s1215_s9 + $0x1b8] sm:$0xff] %v418_v55  ;;  %v422_v57 = vld [vmem:[%s1210_s8 + $0x390] sm:$0xff] }
  0x37   : > { %421 = vst [vmem:[%s1215_s9 + $0x1c0] sm:$0xff] %v420_v56  ;;  %v424_v58 = vld [vmem:[%s1210_s8 + $0x3a0] sm:$0xff]  ;;  %v426_v59 = vld [vmem:[%s1210_s8 + $0x3b0] sm:$0xff]  ;;  %423 = vst [vmem:[%s1215_s9 + $0x1c8] sm:$0xff] %v422_v57 }
  0x38   : > { %425 = vst [vmem:[%s1215_s9 + $0x1d0] sm:$0xff] %v424_v58  ;;  %427 = vst [vmem:[%s1215_s9 + $0x1d8] sm:$0xff] %v426_v59  ;;  %v428_v60 = vld [vmem:[%s1210_s8 + $0x3c0] sm:$0xff]  ;;  %v430_v61 = vld [vmem:[%s1210_s8 + $0x3d0] sm:$0xff] }
  0x39   : > { %v432_v62 = vld [vmem:[%s1210_s8 + $0x3e0] sm:$0xff]  ;;  %429 = vst [vmem:[%s1215_s9 + $0x1e0] sm:$0xff] %v428_v60  ;;  %431 = vst [vmem:[%s1215_s9 + $0x1e8] sm:$0xff] %v430_v61  ;;  %v434_v63 = vld [vmem:[%s1210_s8 + $0x3f0] sm:$0xff] }
  0x3a   : > { %433 = vst [vmem:[%s1215_s9 + $0x1f0] sm:$0xff] %v432_v62  ;;  %435 = vst [vmem:[%s1215_s9 + $0x1f8] sm:$0xff] %v434_v63 }
  0x3b PF: > { %p856_p9 = scmp.ge.s32.totalorder %s1122_s18, 1  ;;  %p440_p10 = scmp.lt.s32.totalorder %s1122_s18, 5 }
  0x3d   : > { %p441_p11 = pnand %p856_p9, %p440_p10 }
  0x3e   : > { %s447_s10 = sand.u32 (!%p441_p11), 1, %s1098_s12   ;;  %v470_v0 = vld [vmem:[%s1489_s1 + $0x8] sm:$0xff] (!%p441_p11)  ;;  %v472_v1 = vld [vmem:[%s1489_s1 + $0x18] sm:$0xff] (!%p441_p11)  ;;  %v1124_v2 = vmov (!%p441_p11), 0  }
  0x3f   : > { %444 = sbr.rel (%p441_p11) target bundleno = 336 (0x150), region = 66  ;;  %s857_s25 = sshll.u32 (!%p441_p11), %s447_s10, 9  ;;  %627 = vmatprep.mubr.f32.mxu0 (!%p441_p11), %v470_v0  ;;  %707 = vmatprep.mubr.f32.mxu1 (!%p441_p11), %v472_v1 }
  0x40   : > { %1066 = vset.pattern.permute.xlu0 (!%p441_p11), %v1124_v2  ;;  %1067 = vset.pattern.permute.xlu1 (!%p441_p11), %v1124_v2  ;;  %s1353_s26 = scalar_lea.vmem (!%p441_p11), [#allocation2], %s857_s25  ;;  %s1007_s22 = smul.u32 (!%p441_p11), 24, %s447_s10 }
  0x41   : > { %v497_v3 = vld [vmem:[%s1353_s26 + $0x80] sm:$0xff] (!%p441_p11)  ;;  %v498_v4 = vld [vmem:[%s1353_s26 + $0x88] sm:$0xff] (!%p441_p11)  ;;  %v499_v14 = vld [vmem:[%s1353_s26 + $0x90] sm:$0xff] (!%p441_p11) }
  0x42   : > { %v481_v5 = vld [vmem:[%s1353_s26] sm:$0xff] (!%p441_p11)  ;;  %v943_v6 = vpack.c.bf16 (!%p441_p11), %v498_v4, %v497_v3  ;;  %v482_v7 = vld [vmem:[%s1353_s26 + $0x8] sm:$0xff] (!%p441_p11)  ;;  %v500_v16 = vld [vmem:[%s1353_s26 + $0x98] sm:$0xff] (!%p441_p11)  ;;  %s468_s24 = scalar_lea.vmem (!%p441_p11), [#allocation3], %s1007_s22 }
  0x43   : > { %v529_v8 = vld [vmem:[%s1353_s26 + $0x180] sm:$0xff] (!%p441_p11)  ;;  %v530_v9 = vld [vmem:[%s1353_s26 + $0x188] sm:$0xff] (!%p441_p11)  ;;  %v945_v10 = vpack.c.bf16 (!%p441_p11), %v482_v7, %v481_v5  ;;  %v483_v17 = vld [vmem:[%s1353_s26 + $0x10] sm:$0xff] (!%p441_p11)  ;;  %v947_v19 = vpack.c.bf16 (!%p441_p11), %v500_v16, %v499_v14 }
  0x44   : > { %v975_v11 = vpack.c.bf16 (!%p441_p11), %v530_v9, %v529_v8  ;;  %v513_v12 = vld [vmem:[%s1353_s26 + $0x100] sm:$0xff] (!%p441_p11)  ;;  %v514_v13 = vld [vmem:[%s1353_s26 + $0x108] sm:$0xff] (!%p441_p11)  ;;  %944 = vmatprep.subr.bf16.mxu0 (!%p441_p11), %v943_v6  ;;  %v484_v18 = vld [vmem:[%s1353_s26 + $0x18] sm:$0xff] (!%p441_p11) }
  0x45   : > { %v977_v15 = vpack.c.bf16 (!%p441_p11), %v514_v13, %v513_v12  ;;  %946 = vmatpush3.bf16.msra.mxu0 (!%p441_p11), %v945_v10  ;;  %v949_v20 = vpack.c.bf16 (!%p441_p11), %v484_v18, %v483_v17  ;;  %v531_v21 = vld [vmem:[%s1353_s26 + $0x190] sm:$0xff] (!%p441_p11)  ;;  %v532_v22 = vld [vmem:[%s1353_s26 + $0x198] sm:$0xff] (!%p441_p11)  ;;  %v501_v26 = vld [vmem:[%s1353_s26 + $0xa0] sm:$0xff] (!%p441_p11) }
  0x46   : > { %976 = vmatprep.subr.bf16.mxu1 %v975_v11  ;;  %v515_v23 = vld [vmem:[%s1353_s26 + $0x110] sm:$0xff]  ;;  %v979_v24 = vpack.c.bf16 %v532_v22, %v531_v21  ;;  %v516_v25 = vld [vmem:[%s1353_s26 + $0x118] sm:$0xff]  ;;  %v502_v27 = vld [vmem:[%s1353_s26 + $0xa8] sm:$0xff]  ;;  %948 = vmatprep.subr.bf16.mxu0 %v947_v19  ;;  %s1008_s12 = smul.u32 (%p1193_p6), 6, %s1110_s15 }
  0x47   : > { %978 = vmatpush3.bf16.msra.mxu1 %v977_v15  ;;  %v981_v28 = vpack.c.bf16 %v516_v25, %v515_v23  ;;  %v951_v29 = vpack.c.bf16 %v502_v27, %v501_v26  ;;  %v485_v30 = vld [vmem:[%s1353_s26 + $0x20] sm:$0xff]  ;;  %v486_v31 = vld [vmem:[%s1353_s26 + $0x28] sm:$0xff]  ;;  %v503_v38 = vld [vmem:[%s1353_s26 + $0xb0] sm:$0xff] }
  0x48   : > { %v533_v32 = vld [vmem:[%s1353_s26 + $0x1a0] sm:$0xff]  ;;  %980 = vmatprep.subr.bf16.mxu1 %v979_v24  ;;  %v534_v33 = vld [vmem:[%s1353_s26 + $0x1a8] sm:$0xff]  ;;  %v953_v36 = vpack.c.bf16 %v486_v31, %v485_v30  ;;  %v504_v39 = vld [vmem:[%s1353_s26 + $0xb8] sm:$0xff]  ;;  %s734_s10 = sadd.s32 (%p1193_p6), %s1106_s14, %s1008_s12 }
  0x49   : > { %v517_v34 = vld [vmem:[%s1353_s26 + $0x120] sm:$0xff]  ;;  %v518_v35 = vld [vmem:[%s1353_s26 + $0x128] sm:$0xff]  ;;  %950 = vmatpush3.bf16.msra.mxu0 %v949_v20  ;;  %v983_v37 = vpack.c.bf16 %v534_v33, %v533_v32  ;;  %v487_v40 = vld [vmem:[%s1353_s26 + $0x30] sm:$0xff]  ;;  %v955_v42 = vpack.c.bf16 %v504_v39, %v503_v38  ;;  %s858_s25 = sshll.u32 (%p1193_p6), %s734_s10, 3 }
  0x4a   : > { %952 = vmatprep.subr.bf16.mxu0 %v951_v29  ;;  %v985_v41 = vpack.c.bf16 %v518_v35, %v517_v34  ;;  %v488_v43 = vld [vmem:[%s1353_s26 + $0x38] sm:$0xff]  ;;  %v535_v44 = vld [vmem:[%s1353_s26 + $0x1b0] sm:$0xff]  ;;  %v505_v49 = vld [vmem:[%s1353_s26 + $0xc0] sm:$0xff]  ;;  %s736_s29 = scalar_lea.vmem (%p1193_p6), %s1491_s3, %s858_s25 }
  0x4b   : > { %982 = vmatpush3.bf16.msra.mxu1 %v981_v28  ;;  %v536_v45 = vld [vmem:[%s1353_s26 + $0x1b8] sm:$0xff]  ;;  %v519_v47 = vld [vmem:[%s1353_s26 + $0x130] sm:$0xff]  ;;  %v506_v50 = vld [vmem:[%s1353_s26 + $0xc8] sm:$0xff]  ;;  %v957_v51 = vpack.c.bf16 %v488_v43, %v487_v40 }
  0x4c   : > { %984 = vmatprep.subr.bf16.mxu1 %v983_v37  ;;  %v987_v46 = vpack.c.bf16 %v536_v45, %v535_v44  ;;  %v520_v48 = vld [vmem:[%s1353_s26 + $0x138] sm:$0xff]  ;;  %v537_v52 = vld [vmem:[%s1353_s26 + $0x1c0] sm:$0xff]  ;;  %v538_v53 = vld [vmem:[%s1353_s26 + $0x1c8] sm:$0xff]  ;;  %v959_v55 = vpack.c.bf16 %v506_v50, %v505_v49 }
  0x4d   : > { %954 = vmatpush3.bf16.msra.mxu0 %v953_v36  ;;  %v989_v54 = vpack.c.bf16 %v520_v48, %v519_v47  ;;  %v489_v56 = vld [vmem:[%s1353_s26 + $0x40] sm:$0xff]  ;;  %v490_v57 = vld [vmem:[%s1353_s26 + $0x48] sm:$0xff]  ;;  %v991_v59 = vpack.c.bf16 %v538_v53, %v537_v52  ;;  %v507_v61 = vld [vmem:[%s1353_s26 + $0xd0] sm:$0xff] }
  0x4e   : > { %956 = vmatprep.subr.bf16.mxu0 %v955_v42  ;;  %v521_v58 = vld [vmem:[%s1353_s26 + $0x140] sm:$0xff]  ;;  %v522_v60 = vld [vmem:[%s1353_s26 + $0x148] sm:$0xff]  ;;  %v508_v62 = vld [vmem:[%s1353_s26 + $0xd8] sm:$0xff]  ;;  %v961_v1 = vpack.c.bf16 %v490_v57, %v489_v56 }
  0x4f   : > { %986 = vmatpush3.bf16.msra.mxu1 %v985_v41  ;;  %v539_v63 = vld [vmem:[%s1353_s26 + $0x1d0] sm:$0xff]  ;;  %v540_v0 = vld [vmem:[%s1353_s26 + $0x1d8] sm:$0xff]  ;;  %v993_v2 = vpack.c.bf16 %v522_v60, %v521_v58  ;;  %v963_v3 = vpack.c.bf16 %v508_v62, %v507_v61  ;;  %v509_v9 = vld [vmem:[%s1353_s26 + $0xe0] sm:$0xff] }
  0x50   : > { %988 = vmatprep.subr.bf16.mxu1 %v987_v46  ;;  %v491_v4 = vld [vmem:[%s1353_s26 + $0x50] sm:$0xff]  ;;  %v492_v5 = vld [vmem:[%s1353_s26 + $0x58] sm:$0xff]  ;;  %v995_v7 = vpack.c.bf16 %v540_v0, %v539_v63  ;;  %v510_v10 = vld [vmem:[%s1353_s26 + $0xe8] sm:$0xff] }
  0x51   : > { %958 = vmatpush3.bf16.msra.mxu0 %v957_v51  ;;  %v523_v6 = vld [vmem:[%s1353_s26 + $0x150] sm:$0xff]  ;;  %v524_v8 = vld [vmem:[%s1353_s26 + $0x158] sm:$0xff]  ;;  %v541_v11 = vld [vmem:[%s1353_s26 + $0x1e0] sm:$0xff]  ;;  %v965_v13 = vpack.c.bf16 %v492_v5, %v491_v4  ;;  %v967_v16 = vpack.c.bf16 %v510_v10, %v509_v9 }
  0x52   : > { %960 = vmatprep.subr.bf16.mxu0 %v959_v55  ;;  %v542_v12 = vld [vmem:[%s1353_s26 + $0x1e8] sm:$0xff]  ;;  %v493_v14 = vld [vmem:[%s1353_s26 + $0x60] sm:$0xff]  ;;  %v997_v15 = vpack.c.bf16 %v524_v8, %v523_v6  ;;  %v511_v21 = vld [vmem:[%s1353_s26 + $0xf0] sm:$0xff] }
  0x53   : > { %990 = vmatpush3.bf16.msra.mxu1 %v989_v54  ;;  %v494_v17 = vld [vmem:[%s1353_s26 + $0x68] sm:$0xff]  ;;  %v525_v18 = vld [vmem:[%s1353_s26 + $0x160] sm:$0xff]  ;;  %v999_v20 = vpack.c.bf16 %v542_v12, %v541_v11  ;;  %v512_v22 = vld [vmem:[%s1353_s26 + $0xf8] sm:$0xff] }
  0x54   : > { %992 = vmatprep.subr.bf16.mxu1 %v991_v59  ;;  %v526_v19 = vld [vmem:[%s1353_s26 + $0x168] sm:$0xff]  ;;  %v545_v23 = vld [vmem:[%s1490_s2] sm:$0xff]  ;;  %v543_v24 = vld [vmem:[%s1353_s26 + $0x1f0] sm:$0xff]  ;;  %v969_v27 = vpack.c.bf16 %v494_v17, %v493_v14  ;;  %v971_v30 = vpack.c.bf16 %v512_v22, %v511_v21 }
  0x55   : > { %962 = vmatpush3.bf16.msra.mxu0 %v961_v1  ;;  %v544_v25 = vld [vmem:[%s1353_s26 + $0x1f8] sm:$0xff]  ;;  %550 = vperm.xlu0 %1066, %v545_v23   ;;  %v547_v26 = vld [vmem:[%s1490_s2 + $0x10] sm:$0xff]  ;;  %v546_v28 = vld [vmem:[%s1490_s2 + $0x8] sm:$0xff]  ;;  %v1001_v29 = vpack.c.bf16 %v526_v19, %v525_v18 }
  0x56   : > { %964 = vmatprep.subr.bf16.mxu0 %v963_v3  ;;  %560 = vperm.xlu1 %1067, %v547_v26   ;;  %v495_v31 = vld [vmem:[%s1353_s26 + $0x70] sm:$0xff]  ;;  %v496_v32 = vld [vmem:[%s1353_s26 + $0x78] sm:$0xff]  ;;  %v1003_v33 = vpack.c.bf16 %v544_v25, %v543_v24  ;;  %v469_v38 = vld [vmem:[%s1489_s1] sm:$0xff] }
  0x57   : > { %994 = vmatpush3.bf16.msra.mxu1 %v993_v2  ;;  %v527_v34 = vld [vmem:[%s1353_s26 + $0x170] sm:$0xff]  ;;  %v528_v35 = vld [vmem:[%s1353_s26 + $0x178] sm:$0xff]  ;;  %v973_v36 = vpack.c.bf16 %v496_v32, %v495_v31  ;;  %v474_v40 = vld [vmem:[%s1489_s1 + $0x28] sm:$0xff] }
  0x58   : > { %996 = vmatprep.subr.bf16.mxu1 %v995_v7  ;;  %v1005_v37 = vpack.c.bf16 %v528_v35, %v527_v34  ;;  %v471_v39 = vld [vmem:[%s1489_s1 + $0x10] sm:$0xff]  ;;  %v476_v41 = vld [vmem:[%s1489_s1 + $0x38] sm:$0xff]  ;;  %v473_v42 = vld [vmem:[%s1489_s1 + $0x20] sm:$0xff] }
  0x59   : > { %966 = vmatpush3.bf16.msra.mxu0 %v965_v13  ;;  %555 = vperm.xlu0 %1066, %v546_v28   ;;  %v475_v43 = vld [vmem:[%s1489_s1 + $0x30] sm:$0xff]  ;;  %v478_v44 = vld [vmem:[%s1489_s1 + $0x48] sm:$0xff]  ;;  %v480_v45 = vld [vmem:[%s1489_s1 + $0x58] sm:$0xff] }
  0x5a   : > { %968 = vmatprep.subr.bf16.mxu0 %v967_v16  ;;  %v477_v46 = vld [vmem:[%s1489_s1 + $0x40] sm:$0xff]  ;;  %v479_v47 = vld [vmem:[%s1489_s1 + $0x50] sm:$0xff] }
  0x5b   : > { %998 = vmatpush3.bf16.msra.mxu1 %v997_v15 }
  0x5c   : > { %1000 = vmatprep.subr.bf16.mxu1 %v999_v20 }
  0x5d   : > { %970 = vmatpush3.bf16.msra.mxu0 %v969_v27 }
  0x5e   : > { %972 = vmatprep.subr.bf16.mxu0 %v971_v30 }
  0x5f   : > { %1002 = vmatpush3.bf16.msra.mxu1 %v1001_v29 }
  0x60   : > { %1004 = vmatprep.subr.bf16.mxu1 %v1003_v33 }
  0x61   : > { %974 = vmatpush3.bf16.msra.mxu0 %v973_v36 }
  0x63   : > { %1006 = vmatpush3.bf16.msra.mxu1 %v1005_v37 }
  0x64   : > { %628 = vmatmul.mubr.f32.vlgmr.msra.gmra.mrb[0].mxu0 %v469_v38 }
  0x65   : > { %632 = vmatprep.mubr.f32.mxu0 %v474_v40 }
  0x66   : > { %708 = vmatmul.mubr.f32.vlgmr.msra.gmra.mrb[0].mxu1 %v471_v39 }
  0x67   : > { %712 = vmatprep.mubr.f32.mxu1 %v476_v41 }
  0x68   : > { %633 = vmatmul.mubr.f32.gmra.mrb[2].mxu0 %v473_v42 }
  0x69   : > { %637 = vmatprep.mubr.f32.mxu0 %v478_v44 }
  0x6a   : > { %713 = vmatmul.mubr.f32.gmra.mrb[2].mxu1 %v475_v43 }
  0x6b   : > { %717 = vmatprep.mubr.f32.mxu1 %v480_v45 }
  0x6c   : > { %638 = vmatmul.mubr.f32.gmra.mrb[4].mxu0 %v477_v46 }
  0x6e   : > { %718 = vmatmul.mubr.f32.gmra.mrb[4].mxu1 %v479_v47 }
  0xd4   : > { %v551_v48 = vpop.permute.xlu0 %550 }
  0xd5   : > { %v561_v2 = vpop.permute.xlu1 %560 }
  0xd8   : > { %v556_v57 = vpop.permute.xlu0 %555 }
 0x137   : > { %v893_v49 = vpop.f32.mrb[0].mxu0 }
 0x138   : > { %v894_v50 = vpop.f32.mrb[1].mxu0 }
 0x139   : > { %v934_v51 = vpop.f32.mrb[0].mxu1  ;;  %v895_v52 = vadd.f32 %v894_v50, %v893_v49 }
 0x13a   : > { %v935_v53 = vpop.f32.mrb[1].mxu1 }
 0x13b   : > { %v936_v54 = vadd.f32 %v935_v53, %v934_v51  ;;  %v630_v55 = vadd.f32 %v895_v52, %v551_v48  ;;  %v896_v56 = vpop.f32.mrb[2].mxu0 }
 0x13c   : > { %v897_v58 = vpop.f32.mrb[3].mxu0 }
 0x13d   : > { %v937_v59 = vpop.f32.mrb[2].mxu1  ;;  %v710_v60 = vadd.f32 %v936_v54, %v630_v55  ;;  %v898_v61 = vadd.f32 %v897_v58, %v896_v56 }
 0x13e   : > { %v938_v62 = vpop.f32.mrb[3].mxu1 }
 0x13f   : > { %v939_v63 = vadd.f32 %v938_v62, %v937_v59  ;;  %723 = vst [vmem:[%s468_s24] sm:$0xff] %v710_v60  ;;  %v635_v0 = vadd.f32 %v898_v61, %v556_v57  ;;  %v899_v1 = vpop.f32.mrb[4].mxu0 }
 0x140   : > { %v900_v3 = vpop.f32.mrb[5].mxu0 }
 0x141   : > { %v940_v4 = vpop.f32.mrb[4].mxu1  ;;  %v715_v5 = vadd.f32 %v939_v63, %v635_v0  ;;  %v901_v6 = vadd.f32 %v900_v3, %v899_v1  ;;  %732 = sbr.rel (!%p1193_p6) target bundleno = 336 (0x150), region = 74 }
 0x142   : > { %v941_v7 = vpop.f32.mrb[5].mxu1 }
 0x143   : > { %v942_v8 = vadd.f32 %v941_v7, %v940_v4  ;;  %724 = vst [vmem:[%s468_s24 + $0x8] sm:$0xff] %v715_v5  ;;  %v640_v9 = vadd.f32 %v901_v6, %v561_v2 }
 0x145   : > { %v720_v10 = vadd.f32 %v942_v8, %v640_v9 }
 0x146   : > { %v768_v11 = vld [vmem:[%s468_s24] sm:$0xff] (%p1193_p6) }
 0x147   : > { %725 = vst [vmem:[%s468_s24 + $0x10] sm:$0xff] %v720_v10  ;;  %769 = vst [vmem:[%s736_s29] sm:$0xff] (%p1193_p6), %v768_v11 }
 0x14a   : > { %v770_v12 = vld [vmem:[%s468_s24 + $0x8] sm:$0xff] }
 0x14b   : > { %771 = vst [vmem:[%s736_s29 + $0x10] sm:$0xff] %v770_v12 }
 0x14e   : > { %v772_v13 = vld [vmem:[%s468_s24 + $0x10] sm:$0xff] }
 0x14f   : > { %773 = vst [vmem:[%s736_s29 + $0x20] sm:$0xff] %v772_v13 }
 0x150 PF: > { %s13_s18 = sadd.s32 1, %s1122_s18   ;;  %s1493_s12 = smov %s1102_s13 }
 0x151   : > { %p10_p12 = scmp.ge.s32.totalorder %s13_s18, 6   ;;  %s1494_s13 = smov %s1201_s27 }
 0x152   : > { %s1495_s14 = smov %s1114_s16  ;;  %s1496_s15 = smov %s1118_s17 }
 0x153   : > { %s1497_s16 = smov %s1500_s19  ;;  %s1498_s17 = smov %s1504_s20 }
 0x154   :  { %12 = sbr.rel (!%p10_p12) target bundleno = 4 (0x4), region = 143 }

</bundles_post_ra>
